<compile_context>
chip_gen: v6e
topology: v6e:2x2x1
jax: 0.10.0
libtpu: 0.0.40
codegen_flags: <defaults>
</compile_context>

<pallas_src>
import functools

import jax
import jax.numpy as jnp
from jax import lax
from jax.experimental import pallas as pl
from jax.experimental.pallas import tpu as pltpu


def _round_up(n, m):
    return ((n + m - 1) // m) * m


def _make_mlp_kernel(n_layers):
    """Kernel body for an n_layers-deep MLP (tanh between layers, none at the end)."""

    def kernel(*refs):
        x_ref = refs[0]
        o_ref = refs[-1]
        wb_refs = refs[1:-1]  # interleaved: w0, b0, w1, b1, ...
        # Contract x [tb, in] against W [out, in] directly (x @ W^T on the MXU).
        dn = (((1,), (1,)), ((), ()))
        h = x_ref[...]
        for l in range(n_layers):
            w_ref = wb_refs[2 * l]
            b_ref = wb_refs[2 * l + 1]
            h = lax.dot_general(h, w_ref[...], dn, preferred_element_type=jnp.float32)
            h = h + b_ref[...]
            if l < n_layers - 1:
                h = jnp.tanh(h)
        o_ref[...] = h.astype(o_ref.dtype)

    return kernel


@functools.partial(jax.jit, static_argnames=("tile_b",))
def mlp_forward(x, params, *, tile_b=512):
    """x: [B, input_size]; params: list of (W [out, in], b [out]) like nn.Linear."""
    B, in_dim = x.shape
    n_layers = len(params)
    assert n_layers >= 1
    out_dim = params[-1][0].shape[0]

    # Lane-dense output: pad the final layer's output features to a multiple of 128.
    out_pad = _round_up(out_dim, 128)
    w_last, b_last = params[-1]
    if out_pad != out_dim:
        w_last = jnp.pad(w_last, ((0, out_pad - out_dim), (0, 0)))
        b_last = jnp.pad(b_last, (0, out_pad - out_dim))
    padded_params = list(params[:-1]) + [(w_last, b_last)]

    layer_dims = [in_dim] + [w.shape[0] for (w, _) in padded_params]  # last is out_pad
    param_elems = sum(w.size + b.size for (w, b) in padded_params)

    # Batch tiling: sublane-aligned (multiple of 8), sized against a VMEM budget.
    tile_b = min(tile_b, _round_up(B, 8))
    tile_b = _round_up(tile_b, 8)

    def vmem_bytes(tb):
        f32 = 4
        x_t = 2 * tb * in_dim * f32           # double-buffered input tile
        o_t = 2 * tb * out_pad * f32          # double-buffered output tile
        wts = 2 * param_elems * f32           # weights/biases (assume 2 buffers)
        act = 2 * tb * max(layer_dims) * f32  # live f32 activations
        return x_t + o_t + wts + act

    # Stay well under the scoped limit (v7x physical VMEM is only 64 MiB).
    while tile_b > 8 and vmem_bytes(tile_b) > (24 << 20):
        tile_b = max(8, tile_b // 2)

    B_pad = _round_up(B, tile_b)
    if B_pad != B:
        x = jnp.pad(x, ((0, B_pad - B), (0, 0)))

    grid = (B_pad // tile_b,)

    flops = 2 * B_pad * sum(d1 * d2 for d1, d2 in zip(layer_dims[:-1], layer_dims[1:]))
    transcendentals = B_pad * sum(layer_dims[1:-1])
    cost = pl.CostEstimate(
        flops=flops,
        transcendentals=transcendentals,
        bytes_accessed=4 * (B_pad * in_dim + B_pad * out_pad + param_elems),
    )

    def resident(shape):
        nd = len(shape)
        return pl.BlockSpec(shape, lambda i: (0,) * nd)

    in_specs = [pl.BlockSpec((tile_b, in_dim), lambda i: (i, 0))]  # streamed x tiles
    call_args = [x]
    for (w, b) in padded_params:
        in_specs.append(resident(w.shape))          # weights stay VMEM-resident
        in_specs.append(resident((1, b.shape[0])))  # biases stay VMEM-resident
        call_args.append(w)
        call_args.append(b[None, :])

    out_padded = pl.pallas_call(
        _make_mlp_kernel(n_layers),
        out_shape=jax.ShapeDtypeStruct((B_pad, out_pad), x.dtype),
        grid=grid,
        in_specs=in_specs,
        out_specs=pl.BlockSpec((tile_b, out_pad), lambda i: (i, 0)),
        compiler_params=pltpu.CompilerParams(
            dimension_semantics=("parallel",),  # v7x: shard batch over 2 TCs
            vmem_limit_bytes=32 << 20,
        ),
        cost_estimate=cost,
    )(*call_args)

    return out_padded[:B, :out_dim]


def init_linear(key, in_dim, out_dim):
    """Deterministic nn.Linear-style init: U(-1/sqrt(in), 1/sqrt(in))."""
    kw, kb = jax.random.split(key)
    bound = 1.0 / jnp.sqrt(jnp.float32(in_dim))
    w = jax.random.uniform(kw, (out_dim, in_dim), jnp.float32, -bound, bound)
    b = jax.random.uniform(kb, (out_dim,), jnp.float32, -bound, bound)
    return w, b


if __name__ == "__main__":
    # MLP(input_size=16, hiddens=[32, 32], output_size=8)
    input_size, hiddens, output_size = 16, [32, 32], 8
    dim_list = [input_size, *hiddens, output_size]
    batch = 128          # enough rows to exercise the batch grid / pipeline
    tile_b = 32          # -> grid of 4 batch tiles

    key = jax.random.PRNGKey(0)
    keys = jax.random.split(key, len(dim_list))  # one per layer + one for input
    params = []
    for i, (d1, d2) in enumerate(zip(dim_list[:-1], dim_list[1:])):
        params.append(init_linear(keys[i], d1, d2))

    x = jax.random.normal(keys[-1], (batch, input_size), jnp.float32)

    out = mlp_forward(x, params, tile_b=tile_b)
    out = jax.block_until_ready(out)

    # Pure-JAX reference check of the same forward semantics.
    ref = x
    for i, (w, b) in enumerate(params):
        ref = ref @ w.T + b
        if i < len(params) - 1:
            ref = jnp.tanh(ref)
    assert out.shape == (batch, output_size)
    assert jnp.allclose(out, ref, atol=1e-5, rtol=1e-5)

    print("KERNEL_OK")
</pallas_src>

<mosaic_0001>
module attributes {stable_mosaic.version = 11 : i64} {
  func.func @kernel(%arg0: i32, %arg1: memref<32x16xf32, #tpu.memory_space<vmem>>, %arg2: memref<32x16xf32, #tpu.memory_space<vmem>>, %arg3: memref<1x32xf32, #tpu.memory_space<vmem>>, %arg4: memref<32x32xf32, #tpu.memory_space<vmem>>, %arg5: memref<1x32xf32, #tpu.memory_space<vmem>>, %arg6: memref<128x32xf32, #tpu.memory_space<vmem>>, %arg7: memref<1x128xf32, #tpu.memory_space<vmem>>, %arg8: memref<32x128xf32, #tpu.memory_space<vmem>>) attributes {dimension_semantics = [#tpu.dimension_semantics<parallel>], iteration_bounds = array<i64: 4>, scalar_prefetch = 0 : i64, scratch_operands = 0 : i64, tpu.core_type = #tpu.core_type<tc>, window_params = [{transform_indices = @transform_0, window_bounds = array<i64: 32, 16>}, {pipeline_mode = #tpu.pipeline_mode<synchronous>, transform_indices = @transform_1, window_bounds = array<i64: 32, 16>}, {pipeline_mode = #tpu.pipeline_mode<synchronous>, transform_indices = @transform_2, window_bounds = array<i64: 1, 32>}, {pipeline_mode = #tpu.pipeline_mode<synchronous>, transform_indices = @transform_3, window_bounds = array<i64: 32, 32>}, {pipeline_mode = #tpu.pipeline_mode<synchronous>, transform_indices = @transform_4, window_bounds = array<i64: 1, 32>}, {pipeline_mode = #tpu.pipeline_mode<synchronous>, transform_indices = @transform_5, window_bounds = array<i64: 128, 32>}, {pipeline_mode = #tpu.pipeline_mode<synchronous>, transform_indices = @transform_6, window_bounds = array<i64: 1, 128>}, {transform_indices = @transform_7, window_bounds = array<i64: 32, 128>}]} {
    %c0 = arith.constant 0 : index
    %c0_0 = arith.constant 0 : index
    %0 = vector.load %arg1[%c0, %c0_0] : memref<32x16xf32, #tpu.memory_space<vmem>>, vector<32x16xf32>
    %c0_1 = arith.constant 0 : index
    %c0_2 = arith.constant 0 : index
    %1 = vector.load %arg2[%c0_1, %c0_2] : memref<32x16xf32, #tpu.memory_space<vmem>>, vector<32x16xf32>
    %cst = arith.constant dense<0.000000e+00> : vector<32x32xf32>
    %2 = tpu.matmul %0, %1, %cst {dimension_numbers = #tpu.dot_dimension_numbers<[1], [1], [0], [0], [0, 0, 1, 0], [], []>} : vector<32x16xf32>, vector<32x16xf32>, vector<32x32xf32> -> vector<32x32xf32>
    %c0_3 = arith.constant 0 : index
    %c0_4 = arith.constant 0 : index
    %3 = vector.load %arg3[%c0_3, %c0_4] : memref<1x32xf32, #tpu.memory_space<vmem>>, vector<1x32xf32>
    %4 = vector.broadcast %3 : vector<1x32xf32> to vector<32x32xf32>
    %5 = arith.addf %2, %4 : vector<32x32xf32>
    %6 = math.tanh %5 : vector<32x32xf32>
    %c0_5 = arith.constant 0 : index
    %c0_6 = arith.constant 0 : index
    %7 = vector.load %arg4[%c0_5, %c0_6] : memref<32x32xf32, #tpu.memory_space<vmem>>, vector<32x32xf32>
    %cst_7 = arith.constant dense<0.000000e+00> : vector<32x32xf32>
    %8 = tpu.matmul %6, %7, %cst_7 {dimension_numbers = #tpu.dot_dimension_numbers<[1], [1], [0], [0], [0, 0, 1, 0], [], []>} : vector<32x32xf32>, vector<32x32xf32>, vector<32x32xf32> -> vector<32x32xf32>
    %c0_8 = arith.constant 0 : index
    %c0_9 = arith.constant 0 : index
    %9 = vector.load %arg5[%c0_8, %c0_9] : memref<1x32xf32, #tpu.memory_space<vmem>>, vector<1x32xf32>
    %10 = vector.broadcast %9 : vector<1x32xf32> to vector<32x32xf32>
    %11 = arith.addf %8, %10 : vector<32x32xf32>
    %12 = math.tanh %11 : vector<32x32xf32>
    %c0_10 = arith.constant 0 : index
    %c0_11 = arith.constant 0 : index
    %13 = vector.load %arg6[%c0_10, %c0_11] : memref<128x32xf32, #tpu.memory_space<vmem>>, vector<128x32xf32>
    %cst_12 = arith.constant dense<0.000000e+00> : vector<32x128xf32>
    %14 = tpu.matmul %12, %13, %cst_12 {dimension_numbers = #tpu.dot_dimension_numbers<[1], [1], [0], [0], [0, 0, 1, 0], [], []>} : vector<32x32xf32>, vector<128x32xf32>, vector<32x128xf32> -> vector<32x128xf32>
    %c0_13 = arith.constant 0 : index
    %c0_14 = arith.constant 0 : index
    %15 = vector.load %arg7[%c0_13, %c0_14] : memref<1x128xf32, #tpu.memory_space<vmem>>, vector<1x128xf32>
    %16 = vector.broadcast %15 : vector<1x128xf32> to vector<32x128xf32>
    %17 = arith.addf %14, %16 : vector<32x128xf32>
    %c0_15 = arith.constant 0 : index
    %c0_16 = arith.constant 0 : index
    %18 = vector.load %arg8[%c0_15, %c0_16] : memref<32x128xf32, #tpu.memory_space<vmem>>, vector<32x128xf32>
    tpu.vector_store %arg8[%c0_15, %c0_16], %17 {strides = array<i32>} : memref<32x128xf32, #tpu.memory_space<vmem>>, vector<32x128xf32>,
    return
  }
  func.func @transform_0(%arg0: i32) -> (i32, i32) {
    %c0_i32 = arith.constant 0 : i32
    %c0_i32_0 = arith.constant 0 : i32
    return %arg0, %c0_i32 : i32, i32
  }
  func.func @transform_1(%arg0: i32) -> (i32, i32) {
    %c0_i32 = arith.constant 0 : i32
    %c0_i32_0 = arith.constant 0 : i32
    %c0_i32_1 = arith.constant 0 : i32
    return %c0_i32, %c0_i32_0 : i32, i32
  }
  func.func @transform_2(%arg0: i32) -> (i32, i32) {
    %c0_i32 = arith.constant 0 : i32
    %c0_i32_0 = arith.constant 0 : i32
    %c0_i32_1 = arith.constant 0 : i32
    return %c0_i32, %c0_i32_0 : i32, i32
  }
  func.func @transform_3(%arg0: i32) -> (i32, i32) {
    %c0_i32 = arith.constant 0 : i32
    %c0_i32_0 = arith.constant 0 : i32
    %c0_i32_1 = arith.constant 0 : i32
    return %c0_i32, %c0_i32_0 : i32, i32
  }
  func.func @transform_4(%arg0: i32) -> (i32, i32) {
    %c0_i32 = arith.constant 0 : i32
    %c0_i32_0 = arith.constant 0 : i32
    %c0_i32_1 = arith.constant 0 : i32
    return %c0_i32, %c0_i32_0 : i32, i32
  }
  func.func @transform_5(%arg0: i32) -> (i32, i32) {
    %c0_i32 = arith.constant 0 : i32
    %c0_i32_0 = arith.constant 0 : i32
    %c0_i32_1 = arith.constant 0 : i32
    return %c0_i32, %c0_i32_0 : i32, i32
  }
  func.func @transform_6(%arg0: i32) -> (i32, i32) {
    %c0_i32 = arith.constant 0 : i32
    %c0_i32_0 = arith.constant 0 : i32
    %c0_i32_1 = arith.constant 0 : i32
    return %c0_i32, %c0_i32_0 : i32, i32
  }
  func.func @transform_7(%arg0: i32) -> (i32, i32) {
    %c0_i32 = arith.constant 0 : i32
    %c0_i32_0 = arith.constant 0 : i32
    return %arg0, %c0_i32 : i32, i32
  }
}

</mosaic_0001>

<bundles_post_ra>
// kernel: mlp_forward.1
= control target key start
LH: loop header
LB: loop body
LE: loop exit
PB: predicated region body
PF: predicated region fallthrough
CT: control target
= control target key end

     0   :  { %s988_s24 = smov 0   ;;  %s1153_s0 = inlined_call_operand.vmem [shape: f32[128,16], index: 0, kind: input, shape index: {}]   ;;  %s1154_s1 = inlined_call_operand.vmem [shape: f32[32,16], index: 1, kind: input, shape index: {}]   ;;  %s1155_s2 = inlined_call_operand.vmem [shape: f32[1,32], index: 2, kind: input, shape index: {}]   ;;  %s1156_s3 = inlined_call_operand.vmem [shape: f32[32,32], index: 3, kind: input, shape index: {}]   ;;  %s1157_s4 = inlined_call_operand.vmem [shape: f32[1,32], index: 4, kind: input, shape index: {}]   ;;  %s1158_s5 = inlined_call_operand.vmem [shape: f32[128,32], index: 5, kind: input, shape index: {}]   ;;  %s1159_s6 = inlined_call_operand.vmem [shape: f32[1,128], index: 6, kind: input, shape index: {}]   ;;  %s1160_s7 = inlined_call_operand.vmem [shape: f32[128,128], index: 7, kind: output, shape index: {}]  }
   0x1 LB: > { %s764_s25 = sadd.s32 4294967295, %s946_s24   ;;  %p768_p0 = scmp.ge.s32.totalorder %s946_s24, 1  ;;  %s946_s24 = sphi %s988_s24, %s17_s24  }
   0x2   : > { %p238_p1 = scmp.lt.s32.totalorder %s946_s24, 5 }
   0x4   : > { %p239_p2 = pnand %p768_p0, %p238_p1 }
   0x5   : > { %s769_s30 = sshll.u32 (!%p239_p2), %s764_s25, 2 }
   0x6   : > { %242 = sbr.rel (%p239_p2) target bundleno = 654 (0x28e), region = 48  ;;  %p271_p3 = scmp.lt.s32.totalorder (!%p239_p2), %s769_s30, 15 }
   0xb   : > { %v289_v0 = vld [vmem:[%s1154_s1 + $0x18] sm:$0xff]  ;;  %vm297_vm0 = vcmask 130048   ;;  %v288_v1 = vld [vmem:[%s1154_s1 + $0x10] sm:$0xff]  ;;  %s1162_s30 = smov (!%p271_p3, %s769_s30), 15  ;;  %v287_v2 = vld [vmem:[%s1154_s1 + $0x8] sm:$0xff]  ;;  %vm422_vm1 = vcmask 261120  }
   0xc   : > { %850 = vmatprep.subr.msk.mxu1 %vm297_vm0, %v289_v0  ;;  %s770_s10 = sshll.u32 %s1162_s30, 3  ;;  %v286_v4 = vld [vmem:[%s1154_s1] sm:$0xff]  ;;  %v414_v8 = vld [vmem:[%s1156_s3 + $0x18] sm:$0xff]  ;;  %v413_v9 = vld [vmem:[%s1156_s3 + $0x10] sm:$0xff] }
   0xd   : > { %851 = vmatpush3.xpose.msk.msra.mxu1 %vm297_vm0, %v289_v0  ;;  %s274_s13 = scalar_lea.vmem %s1153_s0, %s770_s10  ;;  %v412_v10 = vld [vmem:[%s1156_s3 + $0x8] sm:$0xff]  ;;  %v411_v11 = vld [vmem:[%s1156_s3] sm:$0xff]  ;;  %v551_v12 = vld [vmem:[%s1158_s5 + $0x78] sm:$0xff]  ;;  %s280_s25 = scalar_lea.vmem %s1160_s7, %s770_s10 }
   0xe   : > { %852 = vmatprep.subr.msk.mxu1 %vm297_vm0, %v288_v1  ;;  %v282_v3 = vld [vmem:[%s274_s13] sm:$0xff]  ;;  %v283_v5 = vld [vmem:[%s274_s13 + $0x8] sm:$0xff]  ;;  %v284_v6 = vld [vmem:[%s274_s13 + $0x10] sm:$0xff]  ;;  %878 = vmatprep.subr.msk.mxu0 %vm422_vm1, %v551_v12 }
   0xf   : > { %858 = vmatprep.mubr.msk.f32.mxu1 %vm297_vm0, %v282_v3  ;;  %v285_v7 = vld [vmem:[%s274_s13 + $0x18] sm:$0xff]  ;;  %v550_v13 = vld [vmem:[%s1158_s5 + $0x70] sm:$0xff]  ;;  %879 = vmatpush3.xpose.msk.msra.mxu0 %vm422_vm1, %v551_v12  ;;  %v549_v14 = vld [vmem:[%s1158_s5 + $0x68] sm:$0xff] }
  0x10   : > { %880 = vmatprep.subr.msk.mxu0 %vm422_vm1, %v550_v13  ;;  %v548_v15 = vld [vmem:[%s1158_s5 + $0x60] sm:$0xff]  ;;  %v547_v16 = vld [vmem:[%s1158_s5 + $0x58] sm:$0xff]  ;;  %v546_v17 = vld [vmem:[%s1158_s5 + $0x50] sm:$0xff] }
  0x11   : > { %853 = vmatpush3.xpose.msk.msra.mxu1 %vm297_vm0, %v288_v1  ;;  %v545_v18 = vld [vmem:[%s1158_s5 + $0x48] sm:$0xff]  ;;  %v544_v19 = vld [vmem:[%s1158_s5 + $0x40] sm:$0xff]  ;;  %v543_v20 = vld [vmem:[%s1158_s5 + $0x38] sm:$0xff] }
  0x12   : > { %854 = vmatprep.subr.msk.mxu1 %vm297_vm0, %v287_v2  ;;  %v542_v21 = vld [vmem:[%s1158_s5 + $0x30] sm:$0xff]  ;;  %v541_v22 = vld [vmem:[%s1158_s5 + $0x28] sm:$0xff]  ;;  %v773_v23 = vld [vmem:[%s1155_s2] ss:$0 sm:$0xff] }
  0x13   : > { %881 = vmatpush3.xpose.msk.msra.mxu0 %vm422_vm1, %v550_v13  ;;  %v540_v36 = vld [vmem:[%s1158_s5 + $0x20] sm:$0xff]  ;;  %v539_v37 = vld [vmem:[%s1158_s5 + $0x18] sm:$0xff]  ;;  %v538_v38 = vld [vmem:[%s1158_s5 + $0x10] sm:$0xff] }
  0x14   : > { %882 = vmatprep.subr.msk.mxu0 %vm422_vm1, %v549_v14  ;;  %v537_v39 = vld [vmem:[%s1158_s5 + $0x8] sm:$0xff]  ;;  %v536_v40 = vld [vmem:[%s1158_s5] sm:$0xff] }
  0x15   : > { %855 = vmatpush3.xpose.msk.msra.mxu1 %vm297_vm0, %v287_v2  ;;  %v782_v41 = vld [vmem:[%s1157_s4] ss:$0 sm:$0xff] }
  0x16   : > { %856 = vmatprep.subr.msk.mxu1 %vm297_vm0, %v286_v4  ;;  %v791_v54 = vld [vmem:[%s1159_s6] ss:$0 sm:$0xff] }
  0x17   : > { %883 = vmatpush3.xpose.msk.msra.mxu0 %vm422_vm1, %v549_v14 }
  0x18   : > { %884 = vmatprep.subr.msk.mxu0 %vm422_vm1, %v548_v15 }
  0x19   : > { %857 = vmatpush3.xpose.msk.msra.mxu1 %vm297_vm0, %v286_v4 }
  0x1a   : > { %864 = vmatprep.subr.msk.mxu1 %vm422_vm1, %v414_v8 }
  0x1b   : > { %885 = vmatpush3.xpose.msk.msra.mxu0 %vm422_vm1, %v548_v15 }
  0x1c   : > { %859 = vmatmul.mubr.msk.f32.vlgmr.msra.gmra.mxu1 %vm297_vm0, %v283_v5  ;;  %886 = vmatprep.subr.msk.mxu0 %vm422_vm1, %v547_v16 }
  0x1d   : > { %861 = vmatprep.mubr.msk.f32.mxu1 %vm297_vm0, %v284_v6  ;;  %865 = vmatpush3.xpose.msk.msra.mxu1 %vm422_vm1, %v414_v8 }
  0x1e   : > { %866 = vmatprep.subr.msk.mxu1 %vm422_vm1, %v413_v9 }
  0x1f   : > { %887 = vmatpush3.xpose.msk.msra.mxu0 %vm422_vm1, %v547_v16 }
  0x20   : > { %862 = vmatmul.mubr.msk.f32.gmra.mxu1 %vm297_vm0, %v285_v7  ;;  %888 = vmatprep.subr.msk.mxu0 %vm422_vm1, %v546_v17 }
  0x21   : > { %867 = vmatpush3.xpose.msk.msra.mxu1 %vm422_vm1, %v413_v9 }
  0x22   : > { %868 = vmatprep.subr.msk.mxu1 %vm422_vm1, %v412_v10 }
  0x23   : > { %889 = vmatpush3.xpose.msk.msra.mxu0 %vm422_vm1, %v546_v17 }
  0x24   : > { %890 = vmatprep.subr.msk.mxu0 %vm422_vm1, %v545_v18 }
  0x25   : > { %869 = vmatpush3.xpose.msk.msra.mxu1 %vm422_vm1, %v412_v10 }
  0x26   : > { %870 = vmatprep.subr.msk.mxu1 %vm422_vm1, %v411_v11 }
  0x27   : > { %891 = vmatpush3.xpose.msk.msra.mxu0 %vm422_vm1, %v545_v18 }
  0x28   : > { %892 = vmatprep.subr.msk.mxu0 %vm422_vm1, %v544_v19 }
  0x29   : > { %871 = vmatpush3.xpose.msk.msra.mxu1 %vm422_vm1, %v411_v11 }
  0x2b   : > { %893 = vmatpush3.xpose.msk.msra.mxu0 %vm422_vm1, %v544_v19 }
  0x2c   : > { %894 = vmatprep.subr.msk.mxu0 %vm422_vm1, %v543_v20 }
  0x2f   : > { %895 = vmatpush3.xpose.msk.msra.mxu0 %vm422_vm1, %v543_v20 }
  0x30   : > { %896 = vmatprep.subr.msk.mxu0 %vm422_vm1, %v542_v21 }
  0x33   : > { %897 = vmatpush3.xpose.msk.msra.mxu0 %vm422_vm1, %v542_v21 }
  0x34   : > { %898 = vmatprep.subr.msk.mxu0 %vm422_vm1, %v541_v22 }
  0x37   : > { %899 = vmatpush3.xpose.msk.msra.mxu0 %vm422_vm1, %v541_v22 }
  0x38   : > { %900 = vmatprep.subr.msk.mxu0 %vm422_vm1, %v540_v36 }
  0x3b   : > { %901 = vmatpush3.xpose.msk.msra.mxu0 %vm422_vm1, %v540_v36 }
  0x3c   : > { %902 = vmatprep.subr.msk.mxu0 %vm422_vm1, %v539_v37 }
  0x3f   : > { %903 = vmatpush3.xpose.msk.msra.mxu0 %vm422_vm1, %v539_v37 }
  0x40   : > { %904 = vmatprep.subr.msk.mxu0 %vm422_vm1, %v538_v38 }
  0x43   : > { %905 = vmatpush3.xpose.msk.msra.mxu0 %vm422_vm1, %v538_v38 }
  0x44   : > { %906 = vmatprep.subr.msk.mxu0 %vm422_vm1, %v537_v39 }
  0x47   : > { %907 = vmatpush3.xpose.msk.msra.mxu0 %vm422_vm1, %v537_v39 }
  0x48   : > { %908 = vmatprep.subr.msk.mxu0 %vm422_vm1, %v536_v40 }
  0x4b   : > { %909 = vmatpush3.xpose.msk.msra.mxu0 %vm422_vm1, %v536_v40 }
  0xdc   : > { %v860_v24 = vpop.f32.mrf.mxu1 }
  0xdd   : > { %v394_v25 = vadd.f32 %v860_v24, %v773_v23 }
  0xde   : > { %v388_v26 = vpop.f32.mrf.mxu1 }
  0xdf   : > { %v389_v27 = vadd.f32 %v773_v23, %v388_v26 }
  0xe0   : > { %v863_v28 = vpop.f32.mrf.mxu1 }
  0xe1   : > { %924 = vtanh.f32 %v389_v27  ;;  %v404_v29 = vadd.f32 %v863_v28, %v773_v23 }
  0xe2   : > { %926 = vtanh.f32 %v394_v25  ;;  %v398_v30 = vpop.f32.mrf.mxu1 }
  0xe3   : > { %v399_v31 = vadd.f32 %v773_v23, %v398_v30 }
  0xe5   : > { %928 = vtanh.f32 %v399_v31 }
  0xe6   : > { %930 = vtanh.f32 %v404_v29 }
  0xee   : > { %v925_v32 = vpop.eup %924 }
  0xef   : > { %v927_v33 = vpop.eup %926  ;;  %872 = vmatprep.mubr.msk.f32.mxu1 %vm422_vm1, %v925_v32 }
  0xf0   : > { %873 = vmatmul.mubr.msk.f32.vlgmr.msra.gmra.mxu1 %vm422_vm1, %v927_v33 }
  0xf2   : > { %v929_v34 = vpop.eup %928 }
  0xf3   : > { %v931_v35 = vpop.eup %930  ;;  %875 = vmatprep.mubr.msk.f32.mxu1 %vm422_vm1, %v929_v34 }
  0xf4   : > { %876 = vmatmul.mubr.msk.f32.gmra.mxu1 %vm422_vm1, %v931_v35 }
 0x1b0   : > { %v874_v42 = vpop.f32.mrf.mxu1 }
 0x1b1   : > { %v519_v43 = vadd.f32 %v874_v42, %v782_v41 }
 0x1b2   : > { %v513_v44 = vpop.f32.mrf.mxu1 }
 0x1b3   : > { %v514_v45 = vadd.f32 %v782_v41, %v513_v44 }
 0x1b4   : > { %v877_v46 = vpop.f32.mrf.mxu1 }
 0x1b5   : > { %932 = vtanh.f32 %v514_v45  ;;  %v529_v47 = vadd.f32 %v877_v46, %v782_v41 }
 0x1b6   : > { %934 = vtanh.f32 %v519_v43  ;;  %v523_v48 = vpop.f32.mrf.mxu1 }
 0x1b7   : > { %v524_v49 = vadd.f32 %v782_v41, %v523_v48 }
 0x1b9   : > { %936 = vtanh.f32 %v524_v49 }
 0x1ba   : > { %938 = vtanh.f32 %v529_v47 }
 0x1c2   : > { %v933_v50 = vpop.eup %932 }
 0x1c3   : > { %v935_v51 = vpop.eup %934  ;;  %910 = vmatprep.mubr.msk.f32.mxu0 %vm422_vm1, %v933_v50 }
 0x1c4   : > { %911 = vmatmul.mubr.msk.f32.vlgmr.msra.gmra.mxu0 %vm422_vm1, %v935_v51 }
 0x1c6   : > { %v937_v52 = vpop.eup %936 }
 0x1c7   : > { %v939_v53 = vpop.eup %938  ;;  %913 = vmatprep.mubr.msk.f32.mxu0 %vm422_vm1, %v937_v52 }
 0x1c8   : > { %914 = vmatmul.mubr.msk.f32.gmra.mxu0 %vm422_vm1, %v939_v53 }
 0x284   : > { %v912_v55 = vpop.f32.mrf.mxu0 }
 0x285   : > { %v691_v56 = vadd.f32 %v912_v55, %v791_v54 }
 0x286   : > { %v685_v57 = vpop.f32.mrf.mxu0 }
 0x287   : > { %705 = vst [vmem:[%s280_s25 + $0x8] sm:$0xff] %v691_v56  ;;  %v686_v58 = vadd.f32 %v791_v54, %v685_v57 }
 0x288   : > { %v915_v59 = vpop.f32.mrf.mxu0 }
 0x289   : > { %704 = vst [vmem:[%s280_s25] sm:$0xff] %v686_v58  ;;  %v701_v60 = vadd.f32 %v915_v59, %v791_v54 }
 0x28a   : > { %v695_v61 = vpop.f32.mrf.mxu0 }
 0x28b   : > { %707 = vst [vmem:[%s280_s25 + $0x18] sm:$0xff] %v701_v60  ;;  %v696_v62 = vadd.f32 %v791_v54, %v695_v61 }
 0x28d   : > { %706 = vst [vmem:[%s280_s25 + $0x10] sm:$0xff] %v696_v62 }
 0x28e PF: > { %s17_s24 = sadd.s32 1, %s946_s24  }
 0x28f   : > { %p14_p4 = scmp.ge.s32.totalorder %s17_s24, 6  }
 0x291   :  { %16 = sbr.rel (!%p14_p4) target bundleno = 1 (0x1), region = 78 }

</bundles_post_ra>
